<compile_context>
chip_gen: v7x
topology: tpu7x:2x2x1
jax: 0.10.0
libtpu: 0.0.40
codegen_flags: <defaults>
</compile_context>

<pallas_src>
import math

import jax
import jax.numpy as jnp
from jax.experimental import pallas as pl
from jax.experimental.pallas import tpu as pltpu

_LANE = 128
_SUBLANE = 8


def _round_up(x, m):
    return ((x + m - 1) // m) * m


# -----------------------------------------------------------------------------
# Pallas kernel: fused C_GCN forward (gc1 -> LeakyReLU -> gc2 -> l2norm)
# -----------------------------------------------------------------------------
def c_gcn_kernel(rows_ref, w_ref, adj_ref, out_ref):
    x = rows_ref[...]       # [Np, P] bf16: [text|0|1 0 ; 0|vis|0 1], zero pad
    w_fold = w_ref[0]       # [P, P]  bf16: blockdiag(Wt,Wv ; bt,bv) @ W1, pad 0
    w2 = w_ref[1]           # [P, P]  bf16: W2, zero pad
    adj = adj_ref[...]      # [Np, Np] bf16: normalized Laplacian, zero pad

    # gc1: the text/visual Linears (+bias) and gc1's W1 are pre-folded into
    # w_fold, so the in-kernel dependency chain is only 4 MXU dots.
    s1 = jnp.dot(x, w_fold, preferred_element_type=jnp.float32)
    h = jnp.dot(adj, s1.astype(jnp.bfloat16), preferred_element_type=jnp.float32)
    h = jnp.maximum(h, 0.2 * h)                       # LeakyReLU(0.2), f32 VPU

    # gc2: adj @ (h @ W2)
    s2 = jnp.dot(h.astype(jnp.bfloat16), w2, preferred_element_type=jnp.float32)
    y = jnp.dot(adj, s2.astype(jnp.bfloat16), preferred_element_type=jnp.float32)

    # l2norm along features.  Pad columns (>= E) are exactly zero (bf16 cast of
    # 0.0 is 0.0) so row sums match the unpadded ones; rsqrt goes to the
    # otherwise-idle EUP.
    sumsq = jnp.sum(y * y, axis=-1, keepdims=True)
    out_ref[...] = y * jax.lax.rsqrt(sumsq + 1e-24)


# -----------------------------------------------------------------------------
# Per-forward hot path: a single pallas_call, nothing else.
# -----------------------------------------------------------------------------
@jax.jit
def c_gcn_forward(rows, weights, adj):
    """Fused C_GCN forward.

    rows [Np, P] bf16, weights [2, P, P] bf16, adj [Np, Np] bf16
    (all built once by init_c_gcn_params).

    Returns the lane-dense padded [Np, P] f32 slab; rows/cols beyond the real
    N / embed_size are zero.  Downstream consumers should read the slab
    directly; slicing to [:N, :E] costs an extra HLO and a masked layout.
    """
    n_pad, p = rows.shape
    in_bytes = sum(int(a.size) * a.dtype.itemsize for a in (rows, weights, adj))
    out_bytes = n_pad * p * 4
    flops = 4 * n_pad * p * p + 4 * n_pad * n_pad * p   # 2 weight + 2 adj dots

    vmem = lambda: pl.BlockSpec(memory_space=pltpu.MemorySpace.VMEM)
    # TODO(synk): for production-size graphs (N in the thousands; adj = N^2)
    # switch to a row-tiled, 2-phase grid (TM-row blocks, dimension_semantics
    # ("parallel", ...), h staged in HBM between gc1 and gc2, TM multiple of
    # 256 on v6e/v7x) so adj streams/pipelines through VMEM -- mandatory on
    # v7x (64 MiB VMEM, 2 TCs) well before it matters on v5e/v6e.
    return pl.pallas_call(
        c_gcn_kernel,
        out_shape=jax.ShapeDtypeStruct((n_pad, p), jnp.float32),
        in_specs=[vmem(), vmem(), vmem()],
        out_specs=vmem(),
        compiler_params=pltpu.CompilerParams(
            vmem_limit_bytes=int(
                min(100 << 20,
                    max(2 * (in_bytes + out_bytes) + (4 << 20), 8 << 20)))),
        cost_estimate=pl.CostEstimate(
            flops=flops, transcendentals=n_pad,
            bytes_accessed=in_bytes + out_bytes),
    )(rows, weights, adj)


# -----------------------------------------------------------------------------
# Init-time (one-off) packing / folding.  Nothing here runs per forward.
# -----------------------------------------------------------------------------
def init_c_gcn_params(text_emb, vis_emb_normed, Wt, bt, Wv, bv, W1, W2, adj_lap,
                      compute_dtype=jnp.bfloat16):
    n_t, d_t = text_emb.shape
    n_v, d_v = vis_emb_normed.shape
    n = n_t + n_v
    e = W1.shape[1]
    d_in = d_t + d_v + 2                         # +2 bias-indicator columns
    p = max(_round_up(d_in, _LANE), _round_up(e, _LANE))
    n_pad = _round_up(n, _SUBLANE)
    hp = jax.lax.Precision.HIGHEST

    # Block-diagonal packed rows (one MXU pass replaces both Linear layers);
    # the two indicator columns pick up the folded biases from w_fold.
    rows = jnp.zeros((n_pad, p), jnp.float32)
    rows = rows.at[:n_t, :d_t].set(text_emb)
    rows = rows.at[n_t:n, d_t:d_t + d_v].set(vis_emb_normed)
    rows = rows.at[:n_t, d_t + d_v].set(1.0)          # text-bias indicator
    rows = rows.at[n_t:n, d_t + d_v + 1].set(1.0)     # visual-bias indicator

    # blockdiag(Wt, Wv) plus bias rows, pre-folded through gc1's W1:
    #   (x @ Wt + bt) @ W1 == x @ (Wt @ W1) + bt @ W1
    w_bd = jnp.zeros((p, e), jnp.float32)
    w_bd = w_bd.at[:d_t, :].set(Wt)
    w_bd = w_bd.at[d_t:d_t + d_v, :].set(Wv)
    w_bd = w_bd.at[d_t + d_v, :].set(jnp.reshape(bt, (-1,)))
    w_bd = w_bd.at[d_t + d_v + 1, :].set(jnp.reshape(bv, (-1,)))
    w_fold = jnp.zeros((p, p), jnp.float32).at[:, :e].set(
        jnp.matmul(w_bd, W1, precision=hp))
    w2_pad = jnp.zeros((p, p), jnp.float32).at[:e, :e].set(W2)
    weights = jnp.stack([w_fold, w2_pad], axis=0)            # [2, P, P]

    adj_pad = jnp.zeros((n_pad, n_pad), jnp.float32).at[:n, :n].set(adj_lap)

    return {
        "rows": rows.astype(compute_dtype),
        "weights": weights.astype(compute_dtype),
        "adj": adj_pad.astype(compute_dtype),
        "n": n, "e": e, "p": p, "n_pad": n_pad,
    }


# -----------------------------------------------------------------------------
# Plain-JAX glue (init-time preprocessing) + references
# -----------------------------------------------------------------------------
def l2norm(x, eps=1e-12):
    norm = jnp.sqrt(jnp.sum(x * x, axis=-1, keepdims=True)) + eps
    return x / norm


def gen_adj(a):
    # ML-GCN style Laplacian normalization: (A D^{-1/2})^T D^{-1/2}
    d = jnp.power(jnp.clip(jnp.sum(a, axis=1), 1e-12, None), -0.5)
    dm = jnp.diag(d)
    return jnp.matmul(jnp.matmul(a, dm).T, dm)


def jax_reference_f32(text_emb, vis_emb_normed, Wt, bt, Wv, bv, adj_lap, W1, W2):
    """Original module semantics in plain f32 JAX."""
    emb = jnp.concatenate(
        [text_emb @ Wt + bt, vis_emb_normed @ Wv + bv], axis=0)
    x = adj_lap @ (emb @ W1)
    x = jnp.where(x > 0, x, 0.2 * x)
    x = adj_lap @ (x @ W2)
    return l2norm(x)


def jax_reference_kernel_precision(rows, weights, adj):
    """Plain-JAX mirror of the kernel math (same bf16 operands / f32 acc)."""
    w_fold, w2 = weights[0], weights[1]
    s1 = jnp.dot(rows, w_fold, preferred_element_type=jnp.float32)
    h = jnp.dot(adj, s1.astype(rows.dtype), preferred_element_type=jnp.float32)
    h = jnp.maximum(h, 0.2 * h)
    s2 = jnp.dot(h.astype(rows.dtype), w2, preferred_element_type=jnp.float32)
    y = jnp.dot(adj, s2.astype(rows.dtype), preferred_element_type=jnp.float32)
    sumsq = jnp.sum(y * y, axis=-1, keepdims=True)
    return y * jax.lax.rsqrt(sumsq + 1e-24)


if __name__ == "__main__":
    # Small shapes consistent with the module:
    #   N_t text concepts, N_v visual concepts, embedding dims D_t / D_v,
    #   opt.embed_size = E.
    N_t, N_v = 8, 8
    D_t, D_v = 48, 64
    E = 32
    N = N_t + N_v

    key = jax.random.PRNGKey(0)
    ks = jax.random.split(key, 8)

    text_embeddings = jax.random.normal(ks[0], (N_t, D_t), jnp.float32)
    visual_embeddings = jax.random.normal(ks[1], (N_v, D_v), jnp.float32)
    visual_embeddings_n = l2norm(visual_embeddings)           # done in __init__

    # text_linear / visual_linear (Xavier-style uniform, bias = 0)
    r1 = math.sqrt(6.0) / math.sqrt(D_t + E)
    r2 = math.sqrt(6.0) / math.sqrt(D_v + E)
    Wt = jax.random.uniform(ks[2], (D_t, E), jnp.float32, -r1, r1)
    bt = jnp.zeros((E,), jnp.float32)
    Wv = jax.random.uniform(ks[3], (D_v, E), jnp.float32, -r2, r2)
    bv = jnp.zeros((E,), jnp.float32)

    # GraphConvolution weights: uniform(-stdv, stdv), stdv = 1/sqrt(out)
    stdv = 1.0 / math.sqrt(E)
    W1 = jax.random.uniform(ks[4], (E, E), jnp.float32, -stdv, stdv)
    W2 = jax.random.uniform(ks[5], (E, E), jnp.float32, -stdv, stdv)

    # Adjacency over the N concepts (symmetric, self-loops), then gen_adj.
    a_raw = jax.random.uniform(ks[6], (N, N), jnp.float32)
    adj = (a_raw + a_raw.T) * 0.5 + jnp.eye(N, dtype=jnp.float32)
    adj_Laplacian = gen_adj(adj)

    # --- init-time packing / folding (runs once, not per forward) ------------
    params = init_c_gcn_params(text_embeddings, visual_embeddings_n,
                               Wt, bt, Wv, bv, W1, W2, adj_Laplacian)

    # --- forward: one fused pallas_call --------------------------------------
    out_pad = c_gcn_forward(params["rows"], params["weights"], params["adj"])
    out_pad = jax.block_until_ready(out_pad)

    # Consumers should read the padded lane-dense slab; slice only for checks.
    out = out_pad[:N, :E]
    assert out.shape == (N, E)

    # Tight check: plain-JAX mirror with identical bf16-operand/f32-acc math.
    ref_kp = jax_reference_kernel_precision(
        params["rows"], params["weights"], params["adj"])[:N, :E]
    assert jnp.allclose(out, ref_kp, atol=5e-4, rtol=5e-3), \
        "kernel vs same-precision JAX mirror mismatch"

    # Loose check vs the original f32 module semantics (tolerance covers bf16
    # MXU quantization + the W1/bias pre-fold reassociation; output rows are
    # l2-normalized so elements are O(1)).
    ref_f32 = jax_reference_f32(text_embeddings, visual_embeddings_n,
                                Wt, bt, Wv, bv, adj_Laplacian, W1, W2)
    assert jnp.allclose(out, ref_f32, atol=3e-2, rtol=3e-2), \
        "kernel vs f32 module reference mismatch"

    print("KERNEL_OK")
</pallas_src>

<mosaic_0001>
module attributes {stable_mosaic.version = 11 : i64} {
  func.func @c_gcn_kernel(%arg0: memref<16x128xbf16, #tpu.memory_space<vmem>>, %arg1: memref<2x128x128xbf16, #tpu.memory_space<vmem>>, %arg2: memref<16x16xbf16, #tpu.memory_space<vmem>>, %arg3: memref<16x128xf32, #tpu.memory_space<vmem>>) attributes {dimension_semantics = [], scalar_prefetch = 0 : i64, scratch_operands = 0 : i64, tpu.core_type = #tpu.core_type<tc>} {
    %c0 = arith.constant 0 : index
    %c0_0 = arith.constant 0 : index
    %0 = vector.load %arg0[%c0, %c0_0] : memref<16x128xbf16, #tpu.memory_space<vmem>>, vector<16x128xbf16>
    %c0_1 = arith.constant 0 : index
    %c0_2 = arith.constant 0 : index
    %c0_3 = arith.constant 0 : index
    %1 = vector.load %arg1[%c0_1, %c0_2, %c0_3] : memref<2x128x128xbf16, #tpu.memory_space<vmem>>, vector<1x128x128xbf16>
    %2 = vector.shape_cast %1 : vector<1x128x128xbf16> to vector<128x128xbf16>
    %c1 = arith.constant 1 : index
    %c0_4 = arith.constant 0 : index
    %c0_5 = arith.constant 0 : index
    %3 = vector.load %arg1[%c1, %c0_4, %c0_5] : memref<2x128x128xbf16, #tpu.memory_space<vmem>>, vector<1x128x128xbf16>
    %4 = vector.shape_cast %3 : vector<1x128x128xbf16> to vector<128x128xbf16>
    %c0_6 = arith.constant 0 : index
    %c0_7 = arith.constant 0 : index
    %5 = vector.load %arg2[%c0_6, %c0_7] : memref<16x16xbf16, #tpu.memory_space<vmem>>, vector<16x16xbf16>
    %cst = arith.constant dense<0.000000e+00> : vector<16x128xf32>
    %6 = tpu.matmul %0, %2, %cst {dimension_numbers = #tpu.dot_dimension_numbers<[1], [0], [0], [1], [0, 0, 1, 1], [], []>} : vector<16x128xbf16>, vector<128x128xbf16>, vector<16x128xf32> -> vector<16x128xf32>
    %7 = arith.truncf %6 : vector<16x128xf32> to vector<16x128xbf16>
    %cst_8 = arith.constant dense<0.000000e+00> : vector<16x128xf32>
    %8 = tpu.matmul %5, %7, %cst_8 {dimension_numbers = #tpu.dot_dimension_numbers<[1], [0], [0], [1], [0, 0, 1, 1], [], []>} : vector<16x16xbf16>, vector<16x128xbf16>, vector<16x128xf32> -> vector<16x128xf32>
    %cst_9 = arith.constant 2.000000e-01 : f32
    %9 = vector.broadcast %cst_9 : f32 to vector<16x128xf32>
    %10 = arith.mulf %9, %8 : vector<16x128xf32>
    %11 = arith.maximumf %8, %10 : vector<16x128xf32>
    %12 = arith.truncf %11 : vector<16x128xf32> to vector<16x128xbf16>
    %cst_10 = arith.constant dense<0.000000e+00> : vector<16x128xf32>
    %13 = tpu.matmul %12, %4, %cst_10 {dimension_numbers = #tpu.dot_dimension_numbers<[1], [0], [0], [1], [0, 0, 1, 1], [], []>} : vector<16x128xbf16>, vector<128x128xbf16>, vector<16x128xf32> -> vector<16x128xf32>
    %14 = arith.truncf %13 : vector<16x128xf32> to vector<16x128xbf16>
    %cst_11 = arith.constant dense<0.000000e+00> : vector<16x128xf32>
    %15 = tpu.matmul %5, %14, %cst_11 {dimension_numbers = #tpu.dot_dimension_numbers<[1], [0], [0], [1], [0, 0, 1, 1], [], []>} : vector<16x16xbf16>, vector<16x128xbf16>, vector<16x128xf32> -> vector<16x128xf32>
    %16 = arith.mulf %15, %15 : vector<16x128xf32>
    %cst_12 = arith.constant dense<0.000000e+00> : vector<16xf32>
    %17 = vector.multi_reduction <add>, %16, %cst_12 [1] : vector<16x128xf32> to vector<16xf32>
    %18 = vector.shape_cast %17 : vector<16xf32> to vector<16x1xf32>
    %cst_13 = arith.constant 1.000000e-24 : f32
    %19 = vector.broadcast %cst_13 : f32 to vector<16x1xf32>
    %20 = arith.addf %18, %19 : vector<16x1xf32>
    %21 = math.rsqrt %20 : vector<16x1xf32>
    %22 = vector.broadcast %21 : vector<16x1xf32> to vector<16x128xf32>
    %23 = arith.mulf %15, %22 : vector<16x128xf32>
    %c0_14 = arith.constant 0 : index
    %c0_15 = arith.constant 0 : index
    %24 = vector.load %arg3[%c0_14, %c0_15] : memref<16x128xf32, #tpu.memory_space<vmem>>, vector<16x128xf32>
    tpu.vector_store %arg3[%c0_14, %c0_15], %23 {strides = array<i32>} : memref<16x128xf32, #tpu.memory_space<vmem>>, vector<16x128xf32>,
    return
  }
}

</mosaic_0001>

<bundles_post_ra>
// kernel: c_gcn_forward.1
= control target key start
LH: loop header
LB: loop body
LE: loop exit
PB: predicated region body
PF: predicated region fallthrough
CT: control target
= control target key end

     0   :  { %8 = vsyncpa [#allocation3], 0  ;;  %s750_s0 = inlined_call_operand.hbm [shape: bf16[16,128], index: 0, kind: input, shape index: {}]   ;;  %s751_s1 = inlined_call_operand.hbm [shape: bf16[2,128,128], index: 1, kind: input, shape index: {}]   ;;  %s752_s2 = inlined_call_operand.hbm [shape: bf16[16,16], index: 2, kind: input, shape index: {}]   ;;  %s753_s3 = inlined_call_operand.hbm [shape: f32[16,128], index: 3, kind: output, shape index: {}]  }
   0x1   :  { %9 = vsyncpa [#allocation6], 0 }
   0x2   :  { %10 = vsyncpa [#allocation4], 0  ;;  %s628_s12 = smov [#allocation5]   ;;  %s629_s14 = smov [#allocation2]  }
   0x3   :  { %s28_s13 = sshll.u32 %s628_s12, 4  ;;  %s16_s15 = sshll.u32 %s629_s14, 4  ;;  %s29_s13 = int_to_ptr.vmem [resolvable:$true] %s28_s13  ;;  %s658_s15 = int_to_ptr.vmem [resolvable:$true] %s16_s15 }
   0x4   :  { %s534_s18 = scalar_lea.hbm %s751_s1, 2048 }
   0x5   :  { %p535_p0 = scmp.ne.s32.totalorder %s751_s1, %s534_s18  ;;  %p538_p1 = scmp.lt.u32.totalorder %s534_s18, %s751_s1 }
   0x7   :  { %p540_p2 = pnand %p538_p1, %p535_p0 }
   0x9   :  { %543 = shalt.err (!%p540_p2)
}
   0xa   :  { %s544_s23 = scalar_lea.vmem %s29_s13, 2048  ;;  %p549_p4 = scmp.lt.s32.totalorder %s29_s13, %s29_s13 }
   0xb   :  { %p545_p3 = scmp.ne.s32.totalorder %s29_s13, %s544_s23  ;;  %p550_p5 = scmp.lt.s32.totalorder %s544_s23, %s544_s23 }
   0xd   :  { %p551_p6 = por %p550_p5, %p549_p4 }
   0xf   :  { %p552_p7 = pnand %p551_p6, %p545_p3 }
  0x11   :  { %555 = shalt.err (!%p552_p7)
}
  0x12   :  { %s630_s24 = smov 64   ;;  %s631_s25 = smov 4  }
  0x13   :  { %34 = dma.hbm_to_vmem [thread:$0]  %s751_s1, 2048, %s29_s13, [#allocation6], %s630_s24, %s630_s24, %s631_s25  }
  0x14   :  { %s556_s30 = scalar_lea.hbm %s750_s0, 128 }
  0x15   :  { %p557_p8 = scmp.ne.s32.totalorder %s750_s0, %s556_s30  ;;  %p560_p9 = scmp.lt.u32.totalorder %s556_s30, %s750_s0 }
  0x17   :  { %p562_p10 = pnand %p560_p9, %p557_p8 }
  0x19   :  { %565 = shalt.err (!%p562_p10)
}
  0x1a   :  { %s566_s8 = scalar_lea.vmem %s658_s15, 128  ;;  %p571_p12 = scmp.lt.s32.totalorder %s658_s15, %s658_s15 }
  0x1b   :  { %p567_p11 = scmp.ne.s32.totalorder %s658_s15, %s566_s8  ;;  %p572_p13 = scmp.lt.s32.totalorder %s566_s8, %s566_s8 }
  0x1d   :  { %p573_p0 = por %p572_p13, %p571_p12 }
  0x1f   :  { %p574_p1 = pnand %p573_p0, %p567_p11 }
  0x21   :  { %577 = shalt.err (!%p574_p1)
}
  0x22   :  { %22 = dma.hbm_to_vmem [thread:$0]  %s750_s0, 128, %s658_s15, [#allocation3], %s630_s24, %s630_s24, %s631_s25  }
  0x23   :  { %s632_s10 = smov [#allocation7]   ;;  %s578_s14 = scalar_lea.hbm %s752_s2, 128 }
  0x24   :  { %s40_s11 = sshll.u32 %s632_s10, 4  ;;  %p579_p2 = scmp.ne.s32.totalorder %s752_s2, %s578_s14  ;;  %s41_s11 = int_to_ptr.vmem [resolvable:$true] %s40_s11 }
  0x25   :  { %p582_p3 = scmp.lt.u32.totalorder %s578_s14, %s752_s2 }
  0x27   :  { %p584_p4 = pnand %p582_p3, %p579_p2 }
  0x29   :  { %587 = shalt.err (!%p584_p4)
}
  0x2a   :  { %s588_s20 = scalar_lea.vmem %s41_s11, 128  ;;  %p593_p6 = scmp.lt.s32.totalorder %s41_s11, %s41_s11 }
  0x2b   :  { %p589_p5 = scmp.ne.s32.totalorder %s41_s11, %s588_s20  ;;  %p594_p7 = scmp.lt.s32.totalorder %s588_s20, %s588_s20 }
  0x2d   :  { %p595_p8 = por %p594_p7, %p593_p6 }
  0x2f   :  { %p596_p9 = pnand %p595_p8, %p589_p5 }
  0x31   :  { %599 = shalt.err (!%p596_p9)
}
  0x32   :  { %46 = dma.hbm_to_vmem [thread:$0]  %s752_s2, 128, %s41_s11, [#allocation6], %s630_s24, %s630_s24, %s631_s25  }
  0x33   :  { %622 = dma.done.wait [#allocation3], 128  }
  0x34   :  { %623 = vsyncadd [#allocation3], 4294967168 }
  0x35   :  { %624 = dma.done.wait [#allocation6], 2176  }
  0x36   :  { %625 = vsyncadd [#allocation6], 4294965120  ;;  %v633_v0 = vmov 0.0   ;;  %vm634_vm0 = vmmov 0   ;;  %v512_v1 = vld [vmem:[#allocation5] sm:$0xff]   ;;  %v513_v2 = vld [vmem:[#allocation5 + $0x8] sm:$0xff]  }
  0x37   :  { %450 = vmatprep.subr.bf16.mxu0 %v633_v0  ;;  %466 = vmatprep.mubr.msk.bf16.mxu0 %vm634_vm0, %v633_v0  ;;  %v514_v3 = vld [vmem:[#allocation5 + $0x10] sm:$0xff]   ;;  %v515_v4 = vld [vmem:[#allocation5 + $0x18] sm:$0xff]   ;;  %v516_v5 = vld [vmem:[#allocation5 + $0x20] sm:$0xff]   ;;  %vm195_vm1 = vcmask 130048   ;;  %s635_s2 = smov [#allocation8]  }
  0x38   :  { %470 = vmatprep.subr.bf16.mxu1 %v633_v0  ;;  %472 = vmatprep.mubr.msk.bf16.mxu1 %vm634_vm0, %v633_v0  ;;  %v517_v6 = vld [vmem:[#allocation5 + $0x28] sm:$0xff]   ;;  %v518_v7 = vld [vmem:[#allocation5 + $0x30] sm:$0xff]   ;;  %v519_v8 = vld [vmem:[#allocation5 + $0x38] sm:$0xff]   ;;  %s395_s21 = sshll.u32 %s635_s2, 4  ;;  %s396_s21 = int_to_ptr.vmem [resolvable:$true] %s395_s21 }
  0x39   :  { %451 = vmatpush3.bf16.msra.mxu0 %v512_v1  ;;  %v520_v9 = vld [vmem:[#allocation2] sm:$0xff]   ;;  %v521_v15 = vld [vmem:[#allocation7] sm:$0xff]   ;;  %v523_v17 = vld [vmem:[#allocation5 + $0x48] sm:$0xff]   ;;  %s600_s22 = scalar_lea.vmem %s396_s21, 256  ;;  %p605_p11 = scmp.lt.s32.totalorder %s396_s21, %s396_s21 }
  0x3a   :  { %452 = vmatprep.subr.bf16.mxu0 %v633_v0  ;;  %v522_v16 = vld [vmem:[#allocation5 + $0x40] sm:$0xff]   ;;  %v524_v18 = vld [vmem:[#allocation5 + $0x50] sm:$0xff]   ;;  %v525_v19 = vld [vmem:[#allocation5 + $0x58] sm:$0xff]   ;;  %p601_p10 = scmp.ne.s32.totalorder %s396_s21, %s600_s22  ;;  %p606_p12 = scmp.lt.s32.totalorder %s600_s22, %s600_s22 }
  0x3b   :  { %v526_v20 = vld [vmem:[#allocation5 + $0x60] sm:$0xff]   ;;  %v527_v21 = vld [vmem:[#allocation5 + $0x68] sm:$0xff]   ;;  %v528_v22 = vld [vmem:[#allocation5 + $0x70] sm:$0xff]  }
  0x3c   :  { %v529_v23 = vld [vmem:[#allocation5 + $0x78] sm:$0xff]   ;;  %p607_p13 = por %p606_p12, %p605_p11 }
  0x3d   :  { %453 = vmatpush3.bf16.msra.mxu0 %v513_v2 }
  0x3e   :  { %454 = vmatprep.subr.bf16.mxu0 %v633_v0  ;;  %p608_p0 = pnand %p607_p13, %p601_p10 }
  0x41   :  { %455 = vmatpush3.bf16.msra.mxu0 %v514_v3 }
  0x42   :  { %456 = vmatprep.subr.bf16.mxu0 %v633_v0 }
  0x45   :  { %457 = vmatpush3.bf16.msra.mxu0 %v515_v4 }
  0x46   :  { %458 = vmatprep.subr.bf16.mxu0 %v633_v0 }
  0x49   :  { %459 = vmatpush3.bf16.msra.mxu0 %v516_v5 }
  0x4a   :  { %460 = vmatprep.subr.bf16.mxu0 %v633_v0 }
  0x4d   :  { %461 = vmatpush3.bf16.msra.mxu0 %v517_v6 }
  0x4e   :  { %462 = vmatprep.subr.bf16.mxu0 %v633_v0 }
  0x51   :  { %463 = vmatpush3.bf16.msra.mxu0 %v518_v7 }
  0x52   :  { %464 = vmatprep.subr.bf16.mxu0 %v633_v0 }
  0x55   :  { %465 = vmatpush3.bf16.msra.mxu0 %v519_v8 }
  0x56   :  { %496 = vmatprep.subr.bf16.mxu0 %v633_v0 }
  0x58   :  { %467 = vmatmul.mubr.bf16.vlgmr.msra.gmra.mrb[0].mxu0 %v520_v9 }
  0x59   :  { %498 = vmatprep.mubr.msk.bf16.mxu0 %vm634_vm0, %v633_v0 }
 0x12b   :  { %v182_v10 = vpop.f32.mrb[0].mxu0 }
 0x12c   :  { %v468_v11 = vpop.f32.mrb[1].mxu0 }
 0x12d   :  { %v185_v12 = vpop.f32.mrb[2].mxu0 }
 0x12e   :  { %v189_v13 = vpack.c.bf16 %v185_v12, %v182_v10  ;;  %v469_v14 = vpop.f32.mrb[3].mxu0 }
 0x130   :  { %471 = vmatpush3.bf16.msra.mxu1 %v189_v13 }
 0x131   :  { %476 = vmatprep.subr.bf16.mxu1 %v633_v0 }
 0x133   :  { %473 = vmatmul.mubr.msk.bf16.vlgmr.msra.gmra.mrb[0].mxu1 %vm195_vm1, %v521_v15 }
 0x134   :  { %477 = vmatpush3.bf16.msra.mxu1 %v522_v16  ;;  %492 = vmatprep.mubr.msk.bf16.mxu1 %vm634_vm0, %v633_v0 }
 0x135   :  { %478 = vmatprep.subr.bf16.mxu1 %v633_v0 }
 0x138   :  { %479 = vmatpush3.bf16.msra.mxu1 %v523_v17 }
 0x139   :  { %480 = vmatprep.subr.bf16.mxu1 %v633_v0 }
 0x13c   :  { %481 = vmatpush3.bf16.msra.mxu1 %v524_v18 }
 0x13d   :  { %482 = vmatprep.subr.bf16.mxu1 %v633_v0 }
 0x140   :  { %483 = vmatpush3.bf16.msra.mxu1 %v525_v19 }
 0x141   :  { %484 = vmatprep.subr.bf16.mxu1 %v633_v0 }
 0x144   :  { %485 = vmatpush3.bf16.msra.mxu1 %v526_v20 }
 0x145   :  { %486 = vmatprep.subr.bf16.mxu1 %v633_v0 }
 0x148   :  { %487 = vmatpush3.bf16.msra.mxu1 %v527_v21 }
 0x149   :  { %488 = vmatprep.subr.bf16.mxu1 %v633_v0 }
 0x14c   :  { %489 = vmatpush3.bf16.msra.mxu1 %v528_v22 }
 0x14d   :  { %490 = vmatprep.subr.bf16.mxu1 %v633_v0 }
 0x150   :  { %491 = vmatpush3.bf16.msra.mxu1 %v529_v23 }
 0x206   :  { %v233_v24 = vpop.f32.mrb[0].mxu1 }
 0x207   :  { %v240_v25 = vmul.f32 0.2, %v233_v24  ;;  %v474_v26 = vpop.f32.mrb[1].mxu1 }
 0x208   :  { %v236_v27 = vpop.f32.mrb[2].mxu1 }
 0x209   :  { %v241_v28 = vmul.f32 0.2, %v236_v27  ;;  %v475_v29 = vpop.f32.mrb[3].mxu1  ;;  %v242_v30 = vmax.f32 %v233_v24, %v240_v25 }
 0x20b   :  { %v243_v31 = vmax.f32 %v236_v27, %v241_v28 }
 0x20d   :  { %v244_v32 = vpack.c.bf16 %v243_v31, %v242_v30 }
 0x20f   :  { %493 = vmatmul.mubr.bf16.vlgmr.msra.gmra.mrb[4].mxu1 %v244_v32 }
 0x2e2   :  { %v327_v33 = vpop.f32.mrb[4].mxu1 }
 0x2e3   :  { %v494_v34 = vpop.f32.mrb[5].mxu1 }
 0x2e4   :  { %v330_v35 = vpop.f32.mrb[6].mxu1 }
 0x2e5   :  { %v334_v36 = vpack.c.bf16 %v330_v35, %v327_v33  ;;  %v495_v37 = vpop.f32.mrb[7].mxu1 }
 0x2e7   :  { %497 = vmatpush3.bf16.msra.mxu0 %v334_v36 }
 0x2ea   :  { %499 = vmatmul.mubr.msk.bf16.vlgmr.msra.gmra.mrb[4].mxu0 %vm195_vm1, %v521_v15 }
 0x3bd   :  { %v369_v38 = vpop.f32.mrb[4].mxu0 }
 0x3be   :  { %v376_v39 = vmul.f32 %v369_v38, %v369_v38  ;;  %v500_v40 = vpop.f32.mrb[5].mxu0 }
 0x3bf   :  { %v372_v41 = vpop.f32.mrb[6].mxu0 }
 0x3c0   :  { %378 = vadd.xlane.f32.xlu0 %v376_v39  ;;  %v501_v42 = vpop.f32.mrb[7].mxu0  ;;  %v377_v43 = vmul.f32 %v372_v41, %v372_v41 }
 0x3c4   :  { %380 = vadd.xlane.f32.xlu0 %v377_v43 }
 0x44d   :  { %v379_v44 = vpop.xlane.xlu0 %378 }
 0x44e   :  { %v382_v45 = vadd.f32 1e-24, %v379_v44 }
 0x450   :  { %530 = vrsqrt.f32 %v382_v45 }
 0x451   :  { %v381_v46 = vpop.xlane.xlu0 %380 }
 0x452   :  { %v383_v47 = vadd.f32 1e-24, %v381_v46 }
 0x454   :  { %532 = vrsqrt.f32 %v383_v47 }
 0x45a   :  { %v531_v48 = vpop.eup %530 }
 0x45b   :  { %v386_v49 = vmul.f32 %v531_v48, %v369_v38 }
 0x45d   :  { %388 = vst [vmem:[#allocation8] sm:$0xff] %v386_v49 }
 0x45e   :  { %v533_v50 = vpop.eup %532 }
 0x45f   :  { %v387_v51 = vmul.f32 %v533_v50, %v372_v41 }
 0x461   :  { %389 = vst [vmem:[#allocation8 + $0x8] sm:$0xff] %v387_v51 }
 0x462   :  { %611 = shalt.err (!%p608_p0)
}
 0x463   :  { %s612_s25 = scalar_lea.hbm %s753_s3, 256 }
 0x464   :  { %p613_p1 = scmp.ne.s32.totalorder %s753_s3, %s612_s25  ;;  %p616_p2 = scmp.lt.u32.totalorder %s612_s25, %s753_s3 }
 0x466   :  { %p618_p3 = pnand %p616_p2, %p613_p1 }
 0x468   :  { %621 = shalt.err (!%p618_p3)
}
 0x469   :  { %s636_s30 = smov 128   ;;  %s637_s4 = smov 8  }
 0x46a   :  { %401 = dma.vmem_to_hbm [thread:$0]  %s396_s21, 256, %s753_s3, [#allocation4], %s636_s30, %s636_s30, %s637_s4  }
 0x46b   :  { %626 = dma.done.wait [#allocation4], 256  }
 0x46c   :  { %627 = vsyncadd [#allocation4], 4294967040 }
 0x46d   :  { %405 = vsyncpa [#allocation3], 1 }
 0x46e   :  { %406 = vsyncpa [#allocation6], 1 }
 0x46f   :  { %407 = vsyncpa [#allocation4], 1 }

</bundles_post_ra>
